<compile_context>
chip_gen: v5e
topology: v5e:2x2
jax: 0.10.0
libtpu: 0.0.40
codegen_flags: <defaults>
</compile_context>

<pallas_src>
import functools

import jax
import jax.numpy as jnp
from jax.experimental import pallas as pl
from jax.experimental.pallas import tpu as pltpu

_LANE = 128      # last-dim (lane) alignment for hidden activations
_SUBLANE = 8     # second-to-last (sublane) alignment


def _round_up(x, m):
    return ((x + m - 1) // m) * m


def _cdiv(a, b):
    return (a + b - 1) // b


def _actor_fused_kernel(x_ref, *refs, num_layers):
    """Fused MLP (L0, tanh->L1, ..., tanh->L_last) + softmax.

    refs = (w0, b0, w1, b1, ..., w_{L-1}, b_{L-1}, o_ref)
    Hidden feature dims are zero-padded to 128 lanes (padded weight rows/cols
    and bias entries are zero, so padded activation columns stay exactly 0
    through the layer stack since tanh(0)=0).  The last layer is stored
    unpadded, so the softmax is exact over the real output columns and needs
    no mask.
    """
    o_ref = refs[-1]
    wb = refs[:-1]

    h = x_ref[...]                                    # (tile_b, in_pad8) f32
    for i in range(num_layers):                       # static Python loop
        if i > 0:
            h = jnp.tanh(h)                           # EUP transcendental (f32)
        w = wb[2 * i][...]                            # bf16, zero-padded
        b = wb[2 * i + 1][...]                        # (1, n_i) f32
        h = jnp.dot(h.astype(w.dtype), w,
                    preferred_element_type=jnp.float32) + b

    # Exact softmax over the (unpadded) output columns.
    m = jnp.max(h, axis=-1, keepdims=True)
    e = jnp.exp(h - m)
    denom = jnp.sum(e, axis=-1, keepdims=True)
    o_ref[...] = e * pl.reciprocal(denom, approx=True)


def init_actor_params(key, in_size, out_size, layers):
    """nn.Linear-style U(-1/sqrt(fan_in), 1/sqrt(fan_in)) init.

    Weights are stored zero-padded and in bf16:
      layer 0 rows padded to a multiple of 8 (matches the unpadded x stream),
      hidden rows/cols padded to 128 lanes, last layer columns left unpadded.
    Biases are stored in f32 (added after the f32 accumulation).
    """
    sizes = [in_size] + list(layers) + [out_size]
    n = len(sizes) - 1
    params = []
    for i in range(n):
        fan_in, fan_out = sizes[i], sizes[i + 1]
        key, kw, kb = jax.random.split(key, 3)
        bound = 1.0 / float(fan_in) ** 0.5
        w = jax.random.uniform(kw, (fan_in, fan_out), jnp.float32, -bound, bound)
        b = jax.random.uniform(kb, (fan_out,), jnp.float32, -bound, bound)
        row_pad = _round_up(fan_in, _SUBLANE) if i == 0 else _round_up(fan_in, _LANE)
        col_pad = fan_out if i == n - 1 else _round_up(fan_out, _LANE)
        w_p = (jnp.zeros((row_pad, col_pad), jnp.float32)
               .at[:fan_in, :fan_out].set(w).astype(jnp.bfloat16))
        b_p = jnp.zeros((1, col_pad), jnp.float32).at[0, :fan_out].set(b)
        params.append((w_p, b_p))
    return params


def actor_forward(params, x, *, max_tile_b=2048):
    """Returns softmax probabilities, shape (batch, out_size) — the probs of
    the Categorical distribution returned by the PyTorch module."""
    batch, d_in = x.shape
    num_layers = len(params)
    in_pad = params[0][0].shape[0]       # round_up(d_in, 8)
    out_size = params[-1][0].shape[1]    # unpadded

    # Batch tiling: tiles are multiples of 8 sublanes, balanced so the last
    # tile is not mostly empty, and >= 2 tiles whenever the batch allows it so
    # the "parallel" axis can shard across v7x's two TensorCores.
    batch8 = _round_up(batch, _SUBLANE)
    n_tiles = _cdiv(batch8, max_tile_b)
    if n_tiles < 2 and batch8 >= 2 * _SUBLANE:
        n_tiles = 2
    tile_b = _round_up(_cdiv(batch8, n_tiles), _SUBLANE)
    grid = _cdiv(batch8, tile_b)
    batch_pad = grid * tile_b

    # Only pad if actually needed (no 128-lane padding of x anymore).
    if batch_pad != batch or in_pad != d_in:
        x_p = jnp.zeros((batch_pad, in_pad), x.dtype).at[:batch, :d_in].set(x)
    else:
        x_p = x

    flat_wb = []
    in_specs = [pl.BlockSpec((tile_b, in_pad), lambda i: (i, 0))]
    for w, b in params:
        flat_wb += [w, b]
        in_specs.append(pl.BlockSpec(w.shape, lambda i: (0, 0)))   # replicated
        in_specs.append(pl.BlockSpec(b.shape, lambda i: (0, 0)))   # replicated

    out = pl.pallas_call(
        functools.partial(_actor_fused_kernel, num_layers=num_layers),
        out_shape=jax.ShapeDtypeStruct((batch_pad, out_size), jnp.float32),
        grid=(grid,),
        in_specs=in_specs,
        out_specs=pl.BlockSpec((tile_b, out_size), lambda i: (i, 0)),
        compiler_params=pltpu.CompilerParams(
            dimension_semantics=("parallel",),
            vmem_limit_bytes=32 * 1024 * 1024),
    )(x_p, *flat_wb)

    return out[:batch] if batch_pad != batch else out


def actor_forward_ref(params, x, sizes):
    """Pure-JAX f32 reference using the unpadded slices of the stored params."""
    h = x
    for i, (w, b) in enumerate(params):
        fan_in, fan_out = sizes[i], sizes[i + 1]
        if i > 0:
            h = jnp.tanh(h)
        h = h @ w[:fan_in, :fan_out].astype(jnp.float32) + b[0, :fan_out]
    return jax.nn.softmax(h, axis=-1)


if __name__ == "__main__":
    key = jax.random.PRNGKey(0)
    k_param, k_x = jax.random.split(key)

    batch = 2
    in_size = 16
    hidden_layers = [32, 32]
    out_size = 8
    sizes = [in_size] + hidden_layers + [out_size]

    params = init_actor_params(k_param, in_size, out_size, hidden_layers)
    x = jax.random.normal(k_x, (batch, in_size), jnp.float32)

    probs = actor_forward(params, x)
    probs = jax.block_until_ready(probs)

    ref = actor_forward_ref(params, x, sizes)

    assert probs.shape == (batch, out_size)
    # bf16 matmul inputs + approx reciprocal -> looser tolerance vs f32 ref.
    assert jnp.allclose(probs, ref, atol=2e-2, rtol=2e-2)
    assert jnp.allclose(jnp.sum(probs, axis=-1), 1.0, atol=1e-2)

    # TODO(synk): Categorical sampling/log_prob lives outside the kernel;
    # the kernel returns the distribution's probability matrix.
    print("KERNEL_OK")
</pallas_src>

<mosaic_0001>
module attributes {stable_mosaic.version = 11 : i64} {
  func.func @_actor_fused_kernel(%arg0: i32, %arg1: memref<8x16xf32, #tpu.memory_space<vmem>>, %arg2: memref<16x128xbf16, #tpu.memory_space<vmem>>, %arg3: memref<1x128xf32, #tpu.memory_space<vmem>>, %arg4: memref<128x128xbf16, #tpu.memory_space<vmem>>, %arg5: memref<1x128xf32, #tpu.memory_space<vmem>>, %arg6: memref<128x8xbf16, #tpu.memory_space<vmem>>, %arg7: memref<1x8xf32, #tpu.memory_space<vmem>>, %arg8: memref<8x8xf32, #tpu.memory_space<vmem>>) attributes {dimension_semantics = [#tpu.dimension_semantics<parallel>], iteration_bounds = array<i64: 1>, scalar_prefetch = 0 : i64, scratch_operands = 0 : i64, tpu.core_type = #tpu.core_type<tc>, window_params = [{transform_indices = @transform_0, window_bounds = array<i64: 8, 16>}, {pipeline_mode = #tpu.pipeline_mode<synchronous>, transform_indices = @transform_1, window_bounds = array<i64: 16, 128>}, {pipeline_mode = #tpu.pipeline_mode<synchronous>, transform_indices = @transform_2, window_bounds = array<i64: 1, 128>}, {pipeline_mode = #tpu.pipeline_mode<synchronous>, transform_indices = @transform_3, window_bounds = array<i64: 128, 128>}, {pipeline_mode = #tpu.pipeline_mode<synchronous>, transform_indices = @transform_4, window_bounds = array<i64: 1, 128>}, {pipeline_mode = #tpu.pipeline_mode<synchronous>, transform_indices = @transform_5, window_bounds = array<i64: 128, 8>}, {pipeline_mode = #tpu.pipeline_mode<synchronous>, transform_indices = @transform_6, window_bounds = array<i64: 1, 8>}, {transform_indices = @transform_7, window_bounds = array<i64: 8, 8>}]} {
    %c0 = arith.constant 0 : index
    %c0_0 = arith.constant 0 : index
    %0 = vector.load %arg1[%c0, %c0_0] : memref<8x16xf32, #tpu.memory_space<vmem>>, vector<8x16xf32>
    %c0_1 = arith.constant 0 : index
    %c0_2 = arith.constant 0 : index
    %1 = vector.load %arg2[%c0_1, %c0_2] : memref<16x128xbf16, #tpu.memory_space<vmem>>, vector<16x128xbf16>
    %c0_3 = arith.constant 0 : index
    %c0_4 = arith.constant 0 : index
    %2 = vector.load %arg3[%c0_3, %c0_4] : memref<1x128xf32, #tpu.memory_space<vmem>>, vector<1x128xf32>
    %3 = arith.truncf %0 : vector<8x16xf32> to vector<8x16xbf16>
    %cst = arith.constant dense<0.000000e+00> : vector<8x128xf32>
    %4 = tpu.matmul %3, %1, %cst {dimension_numbers = #tpu.dot_dimension_numbers<[1], [0], [0], [1], [0, 0, 1, 1], [], []>} : vector<8x16xbf16>, vector<16x128xbf16>, vector<8x128xf32> -> vector<8x128xf32>
    %5 = vector.broadcast %2 : vector<1x128xf32> to vector<8x128xf32>
    %6 = arith.addf %4, %5 : vector<8x128xf32>
    %7 = math.tanh %6 : vector<8x128xf32>
    %c0_5 = arith.constant 0 : index
    %c0_6 = arith.constant 0 : index
    %8 = vector.load %arg4[%c0_5, %c0_6] : memref<128x128xbf16, #tpu.memory_space<vmem>>, vector<128x128xbf16>
    %c0_7 = arith.constant 0 : index
    %c0_8 = arith.constant 0 : index
    %9 = vector.load %arg5[%c0_7, %c0_8] : memref<1x128xf32, #tpu.memory_space<vmem>>, vector<1x128xf32>
    %10 = arith.truncf %7 : vector<8x128xf32> to vector<8x128xbf16>
    %cst_9 = arith.constant dense<0.000000e+00> : vector<8x128xf32>
    %11 = tpu.matmul %10, %8, %cst_9 {dimension_numbers = #tpu.dot_dimension_numbers<[1], [0], [0], [1], [0, 0, 1, 1], [], []>} : vector<8x128xbf16>, vector<128x128xbf16>, vector<8x128xf32> -> vector<8x128xf32>
    %12 = vector.broadcast %9 : vector<1x128xf32> to vector<8x128xf32>
    %13 = arith.addf %11, %12 : vector<8x128xf32>
    %14 = math.tanh %13 : vector<8x128xf32>
    %c0_10 = arith.constant 0 : index
    %c0_11 = arith.constant 0 : index
    %15 = vector.load %arg6[%c0_10, %c0_11] : memref<128x8xbf16, #tpu.memory_space<vmem>>, vector<128x8xbf16>
    %c0_12 = arith.constant 0 : index
    %c0_13 = arith.constant 0 : index
    %16 = vector.load %arg7[%c0_12, %c0_13] : memref<1x8xf32, #tpu.memory_space<vmem>>, vector<1x8xf32>
    %17 = arith.truncf %14 : vector<8x128xf32> to vector<8x128xbf16>
    %cst_14 = arith.constant dense<0.000000e+00> : vector<8x8xf32>
    %18 = tpu.matmul %17, %15, %cst_14 {dimension_numbers = #tpu.dot_dimension_numbers<[1], [0], [0], [1], [0, 0, 1, 1], [], []>} : vector<8x128xbf16>, vector<128x8xbf16>, vector<8x8xf32> -> vector<8x8xf32>
    %19 = vector.broadcast %16 : vector<1x8xf32> to vector<8x8xf32>
    %20 = arith.addf %18, %19 : vector<8x8xf32>
    %cst_15 = arith.constant dense<0xFF800000> : vector<8xf32>
    %21 = vector.multi_reduction <maximumf>, %20, %cst_15 [1] : vector<8x8xf32> to vector<8xf32>
    %22 = vector.shape_cast %21 : vector<8xf32> to vector<8x1xf32>
    %23 = vector.broadcast %22 : vector<8x1xf32> to vector<8x8xf32>
    %24 = arith.subf %20, %23 : vector<8x8xf32>
    %25 = math.exp %24 : vector<8x8xf32>
    %cst_16 = arith.constant dense<0.000000e+00> : vector<8xf32>
    %26 = vector.multi_reduction <add>, %25, %cst_16 [1] : vector<8x8xf32> to vector<8xf32>
    %27 = vector.shape_cast %26 : vector<8xf32> to vector<8x1xf32>
    %28 = tpu.reciprocal %27 {approx = true} : vector<8x1xf32> -> vector<8x1xf32>
    %29 = vector.broadcast %28 : vector<8x1xf32> to vector<8x8xf32>
    %30 = arith.mulf %25, %29 : vector<8x8xf32>
    %c0_17 = arith.constant 0 : index
    %c0_18 = arith.constant 0 : index
    %31 = vector.load %arg8[%c0_17, %c0_18] : memref<8x8xf32, #tpu.memory_space<vmem>>, vector<8x8xf32>
    tpu.vector_store %arg8[%c0_17, %c0_18], %30 {strides = array<i32>} : memref<8x8xf32, #tpu.memory_space<vmem>>, vector<8x8xf32>,
    return
  }
  func.func @transform_0(%arg0: i32) -> (i32, i32) {
    %c0_i32 = arith.constant 0 : i32
    %c0_i32_0 = arith.constant 0 : i32
    return %arg0, %c0_i32 : i32, i32
  }
  func.func @transform_1(%arg0: i32) -> (i32, i32) {
    %c0_i32 = arith.constant 0 : i32
    %c0_i32_0 = arith.constant 0 : i32
    %c0_i32_1 = arith.constant 0 : i32
    return %c0_i32, %c0_i32_0 : i32, i32
  }
  func.func @transform_2(%arg0: i32) -> (i32, i32) {
    %c0_i32 = arith.constant 0 : i32
    %c0_i32_0 = arith.constant 0 : i32
    %c0_i32_1 = arith.constant 0 : i32
    return %c0_i32, %c0_i32_0 : i32, i32
  }
  func.func @transform_3(%arg0: i32) -> (i32, i32) {
    %c0_i32 = arith.constant 0 : i32
    %c0_i32_0 = arith.constant 0 : i32
    %c0_i32_1 = arith.constant 0 : i32
    return %c0_i32, %c0_i32_0 : i32, i32
  }
  func.func @transform_4(%arg0: i32) -> (i32, i32) {
    %c0_i32 = arith.constant 0 : i32
    %c0_i32_0 = arith.constant 0 : i32
    %c0_i32_1 = arith.constant 0 : i32
    return %c0_i32, %c0_i32_0 : i32, i32
  }
  func.func @transform_5(%arg0: i32) -> (i32, i32) {
    %c0_i32 = arith.constant 0 : i32
    %c0_i32_0 = arith.constant 0 : i32
    %c0_i32_1 = arith.constant 0 : i32
    return %c0_i32, %c0_i32_0 : i32, i32
  }
  func.func @transform_6(%arg0: i32) -> (i32, i32) {
    %c0_i32 = arith.constant 0 : i32
    %c0_i32_0 = arith.constant 0 : i32
    %c0_i32_1 = arith.constant 0 : i32
    return %c0_i32, %c0_i32_0 : i32, i32
  }
  func.func @transform_7(%arg0: i32) -> (i32, i32) {
    %c0_i32 = arith.constant 0 : i32
    %c0_i32_0 = arith.constant 0 : i32
    return %arg0, %c0_i32 : i32, i32
  }
}

</mosaic_0001>

<bundles_post_ra>
// kernel: tpu_custom_call.1
= control target key start
LH: loop header
LB: loop body
LE: loop exit
PB: predicated region body
PF: predicated region fallthrough
CT: control target
= control target key end

     0   :  { %12 = vsyncpa [#allocation3], 0  ;;  %s580_s0 = inlined_call_operand.hbm [shape: f32[8,16], index: 0, kind: input, shape index: {}]   ;;  %s581_s1 = inlined_call_operand.hbm [shape: bf16[16,128], index: 1, kind: input, shape index: {}]   ;;  %s582_s2 = inlined_call_operand.vmem [shape: f32[1,128], index: 2, kind: input, shape index: {}]   ;;  %s583_s3 = inlined_call_operand.vmem [shape: bf16[128,128], index: 3, kind: input, shape index: {}]   ;;  %s584_s4 = inlined_call_operand.vmem [shape: f32[1,128], index: 4, kind: input, shape index: {}]   ;;  %s585_s5 = inlined_call_operand.vmem [shape: bf16[128,8], index: 5, kind: input, shape index: {}]   ;;  %s586_s6 = inlined_call_operand.vmem [shape: f32[1,8], index: 6, kind: input, shape index: {}]   ;;  %s587_s7 = inlined_call_operand.hbm [shape: f32[8,8], index: 7, kind: output, shape index: {}]  }
   0x1   :  { %13 = vsyncpa [#allocation6], 0 }
   0x2   :  { %14 = vsyncpa [#allocation4], 0  ;;  %s20_s26 = sshll.u32 %s580_s0, 4  ;;  %s466_s27 = smov [#allocation2]   ;;  %s21_s26 = int_to_ptr.hbm [resolvable:$true] %s20_s26 }
   0x3   :  { %s22_s28 = sshll.u32 %s466_s27, 4  ;;  %s30_s8 = sshll.u32 %s581_s1, 4  ;;  %s23_s28 = int_to_ptr.vmem [resolvable:$true] %s22_s28  ;;  %s31_s8 = int_to_ptr.hbm [resolvable:$true] %s30_s8 }
   0x4   :  { %25 = dma.hbm_to_vmem [thread:$0]  %s21_s26, 128, %s23_s28, [#allocation3]  }
   0x5   :  { %s467_s9 = smov [#allocation5]   ;;  %s468_s11 = smov 64  }
   0x6   :  { %s32_s10 = sshll.u32 %s467_s9, 4  ;;  %s469_s12 = smov 4   ;;  %s33_s10 = int_to_ptr.vmem [resolvable:$true] %s32_s10 }
   0x7   :  { %38 = dma.hbm_to_vmem [thread:$0]  %s31_s8, 128, %s33_s10, [#allocation6], %s468_s11, %s468_s11, %s469_s12  }
   0x8   :  { %460 = dma.done.wait [#allocation3], 128  }
   0x9   :  { %461 = vsyncadd [#allocation3], 4294967168 }
   0xa   :  { %462 = dma.done.wait [#allocation6], 128  }
   0xb   :  { %463 = vsyncadd [#allocation6], 4294967168  ;;  %v355_v0 = vld [vmem:[#allocation5] sm:$0xff]  ;;  %v58_v1 = vld [vmem:[#allocation2] sm:$0xff]  ;;  %vm72_vm0 = vcmask 130048   ;;  %vm255_vm1 = vcmask 64512  }
   0xc   :  { %v363_v2 = vld [vmem:[%s583_s3 + $0x38] sm:$0xff]  ;;  %v62_v3 = vpack.c.bf16 %v58_v1, %v58_v1  ;;  %83 = vmatpush.bf16.msra.mxu0 %v355_v0  ;;  %v362_v4 = vld [vmem:[%s583_s3 + $0x30] sm:$0xff]  ;;  %v361_v5 = vld [vmem:[%s583_s3 + $0x28] sm:$0xff]  ;;  %s275_s23 = sshll.u32 %s587_s7, 4  ;;  %s276_s23 = int_to_ptr.hbm [resolvable:$true] %s275_s23 }
   0xd   :  { %159 = vmatpush.bf16.msra.mxu1 %v363_v2  ;;  %v360_v6 = vld [vmem:[%s583_s3 + $0x20] sm:$0xff]  ;;  %v359_v7 = vld [vmem:[%s583_s3 + $0x18] sm:$0xff]  ;;  %v358_v8 = vld [vmem:[%s583_s3 + $0x10] sm:$0xff] }
   0xe   :  { %v357_v9 = vld [vmem:[%s583_s3 + $0x8] sm:$0xff]  ;;  %v356_v10 = vld [vmem:[%s583_s3] sm:$0xff]  ;;  %v371_v11 = vld [vmem:[%s585_s5 + $0x38] sm:$0xff] }
   0xf   :  { %290 = vmatmul.msk.bf16.vlgmr.msra.gmra.mxu0 %vm72_vm0, %v62_v3  ;;  %242 = vmatpush.bf16.msra.mxu2 %v371_v11  ;;  %v370_v12 = vld [vmem:[%s585_s5 + $0x30] sm:$0xff]  ;;  %v369_v13 = vld [vmem:[%s585_s5 + $0x28] sm:$0xff]  ;;  %v368_v14 = vld [vmem:[%s585_s5 + $0x20] sm:$0xff] }
  0x10   :  { %v367_v15 = vld [vmem:[%s585_s5 + $0x18] sm:$0xff]  ;;  %v377_v16 = vld [vmem:[%s582_s2] ss:$0 sm:$0xff]  ;;  %v366_v22 = vld [vmem:[%s585_s5 + $0x10] sm:$0xff] }
  0x11   :  { %160 = vmatpush.bf16.msra.mxu1 %v362_v4  ;;  %v365_v23 = vld [vmem:[%s585_s5 + $0x8] sm:$0xff]  ;;  %v364_v24 = vld [vmem:[%s585_s5] sm:$0xff] }
  0x12   :  { %v378_v25 = vld [vmem:[%s584_s4] ss:$0 sm:$0xff]  ;;  %s470_s4 = smov [#allocation7]  }
  0x13   :  { %243 = vmatpush.bf16.msra.mxu2 %v370_v12  ;;  %v379_v31 = vld [vmem:[%s586_s6] ss:$0 sm:$0xff]  ;;  %s273_s5 = sshll.u32 %s470_s4, 4  ;;  %s274_s5 = int_to_ptr.vmem [resolvable:$true] %s273_s5 }
  0x15   :  { %161 = vmatpush.bf16.msra.mxu1 %v361_v5 }
  0x17   :  { %244 = vmatpush.bf16.msra.mxu2 %v369_v13 }
  0x19   :  { %162 = vmatpush.bf16.msra.mxu1 %v360_v6 }
  0x1b   :  { %245 = vmatpush.bf16.msra.mxu2 %v368_v14 }
  0x1d   :  { %163 = vmatpush.bf16.msra.mxu1 %v359_v7 }
  0x1f   :  { %246 = vmatpush.bf16.msra.mxu2 %v367_v15 }
  0x21   :  { %164 = vmatpush.bf16.msra.mxu1 %v358_v8 }
  0x23   :  { %247 = vmatpush.bf16.msra.mxu2 %v366_v22 }
  0x25   :  { %165 = vmatpush.bf16.msra.mxu1 %v357_v9 }
  0x27   :  { %248 = vmatpush.bf16.msra.mxu2 %v365_v23 }
  0x29   :  { %166 = vmatpush.bf16.msra.mxu1 %v356_v10 }
  0x2b   :  { %249 = vmatpush.bf16.msra.mxu2 %v364_v24 }
  0x8c   :  { %v85_v17 = vpop.f32.mrf.mxu0 }
  0x8d   :  { %v86_v18 = vadd.f32 %v377_v16, %v85_v17 }
  0x8f   :  { %380 = vtanh.f32 %v86_v18 }
  0x94   :  { %v87_v19 = vpop.f32.mrf.mxu0 }
  0x95   :  { %v381_v20 = vpop.eup %380 }
  0x96   :  { %v107_v21 = vpack.c.bf16 %v381_v20, %v381_v20 }
  0x98   :  { %167 = vmatmul.bf16.vlgmr.msra.gmra.mxu1 %v107_v21 }
 0x115   :  { %v168_v26 = vpop.f32.mrf.mxu1 }
 0x116   :  { %v169_v27 = vadd.f32 %v378_v25, %v168_v26 }
 0x118   :  { %382 = vtanh.f32 %v169_v27 }
 0x11d   :  { %v170_v28 = vpop.f32.mrf.mxu1 }
 0x11e   :  { %v383_v29 = vpop.eup %382 }
 0x11f   :  { %v190_v30 = vpack.c.bf16 %v383_v29, %v383_v29 }
 0x121   :  { %250 = vmatmul.bf16.vlgmr.msra.gmra.mxu2 %v190_v30 }
 0x1a4   :  { %v251_v32 = vpop.f32.mrf.mxu2 }
 0x1a5   :  { %v252_v33 = vadd.f32 %v379_v31, %v251_v32 }
 0x1a7   :  { %v256_v34 = vsel %vm255_vm1, %v252_v33, -inf }
 0x1a8   :  { %257 = vmax.xlane.f32.xlu0 %v256_v34 }
 0x1ac   :  { %v253_v35 = vpop.f32.mrf.mxu2 }
 0x21b   :  { %v258_v36 = vpop.xlane.xlu0 %257 }
 0x21c   :  { %v259_v37 = vsub.f32 %v252_v33, %v258_v36 }
 0x21e   :  { %v260_v38 = vmul.f32 1.442695, %v259_v37 }
 0x220   :  { %384 = vpow2.f32 %v260_v38 }
 0x226   :  { %v385_v39 = vpop.eup %384 }
 0x227   :  { %v262_v40 = vsel %vm255_vm1, %v385_v39, 0.0 }
 0x228   :  { %263 = vadd.xlane.f32.xlu0 %v262_v40 }
 0x29b   :  { %v264_v41 = vpop.xlane.xlu0 %263 }
 0x29c   :  { %386 = vrcp.f32 %v264_v41 }
 0x2a2   :  { %v387_v42 = vpop.eup %386 }
 0x2a3   :  { %v266_v43 = vmul.f32 %v387_v42, %v385_v39 }
 0x2a5   :  { %267 = vst.msk [vmem:[#allocation7] sm:$0xff] %vm255_vm1, %v266_v43 }
 0x2a6   :  { %278 = dma.vmem_to_hbm [thread:$0]  %s274_s5, 128, %s276_s23, [#allocation4]  }
 0x2a7   :  { %464 = dma.done.wait [#allocation4], 128  }
 0x2a8   :  { %465 = vsyncadd [#allocation4], 4294967168 }
 0x2a9   :  { %283 = vsyncpa [#allocation3], 1 }
 0x2aa   :  { %284 = vsyncpa [#allocation6], 1 }
 0x2ab   :  { %285 = vsyncpa [#allocation4], 1 }

</bundles_post_ra>
